<compile_context>
chip_gen: v7x
topology: tpu7x:2x2x1
jax: 0.10.0
libtpu: 0.0.40
codegen_flags: <defaults>
</compile_context>

<pallas_src>
import functools

import jax
import jax.numpy as jnp
from jax.experimental import pallas as pl
from jax.experimental.pallas import tpu as pltpu

EPS = 1.17e-6                          # torchmetrics epsilon for MAPE
LANES = 128
MAX_TILE_ROWS = 8192                   # (8192,128) f32 block = 4 MiB / operand
VMEM_LIMIT_BYTES = 40 * 1024 * 1024    # explicit scoped-VMEM budget (all chips)


@functools.lru_cache(maxsize=None)
def _chip_profile():
    """Best-effort chip detection -> (tensorcores_per_chip, use_eup_reciprocal).

    Defaults to (1, False): single-core grid + exact divide, which is both
    correct everywhere and the recommended configuration for v5e/v6e.
    """
    gen7 = False
    try:
        kind = jax.devices()[0].device_kind.lower()
        gen7 = "7" in kind             # "tpu7x" / "tpu v7x"
    except Exception:
        pass
    cores = 2 if gen7 else 1
    try:
        info = pltpu.get_tpu_info()
        for name in ("num_tensorcores", "tensorcore_count", "num_cores",
                     "cores_per_chip", "core_count"):
            v = getattr(info, name, None)
            if isinstance(v, int) and v >= 1:
                cores = v
                break
    except Exception:
        pass
    cores = max(1, min(2, cores))      # only ever split 2-way (v7x has 2 TCs)
    return cores, gen7


def _make_mape_kernel(tile_rows, acc_rows, rows_valid, inner_steps,
                      mask_from, total_logical_tiles, splits, use_approx):
    """Build the kernel body with all static tiling parameters closed over."""
    need_mask = mask_from < total_logical_tiles

    def kernel(o_ref, t_ref, out_ref, acc_ref):
        if splits > 1:
            c = pl.program_id(0)       # core-split axis ("parallel")
            i = pl.program_id(1)       # reduction axis ("arbitrary")
        else:
            c = 0
            i = pl.program_id(0)

        # Zero the per-core accumulator at the start of each core's sweep.
        @pl.when(i == 0)
        def _():
            acc_ref[...] = jnp.zeros_like(acc_ref)

        o = o_ref[...].astype(jnp.float32)
        t = t_ref[...].astype(jnp.float32)
        denom = jnp.maximum(jnp.abs(t), EPS)
        if use_approx:
            # EUP-routed approx reciprocal frees VALU slots on v7x (~2^-12 rel
            # error per element, averaged out by the mean).
            ape = jnp.abs(o - t) * pl.reciprocal(denom, approx=True)
        else:
            ape = jnp.abs(o - t) / denom

        def accumulate(vals):
            if tile_rows % acc_rows == 0:
                # acc_rows/8 independent vreg add chains -> VALU ILP; the
                # cross-lane reduce is deferred to the (tiny) wrapper sum.
                acc_ref[...] += vals.reshape(-1, acc_rows, LANES).sum(axis=0)
            else:
                # Tiny-input fallback (single tile with rows < 8 or not a
                # multiple of 8): one sublane reduce, runs at most once.
                acc_ref[0:1, :] += vals.sum(axis=0, keepdims=True)

        if need_mask:
            logical_tile = c * inner_steps + i
            needs_masking = logical_tile >= mask_from

            # Masking only on the last real (ragged) tile and on clamped
            # out-of-range tiles; interior tiles take the mask-free path.
            @pl.when(needs_masking)
            def _():
                row = (logical_tile * tile_rows
                       + jax.lax.broadcasted_iota(jnp.int32,
                                                  (tile_rows, LANES), 0))
                # Select (not multiply): garbage rows may hold NaN/Inf.
                accumulate(jnp.where(row < rows_valid, ape, 0.0))

            @pl.when(jnp.logical_not(needs_masking))
            def _():
                accumulate(ape)
        else:
            accumulate(ape)

        # Emit this core's partial-sum block on its last reduction step.
        @pl.when(i == inner_steps - 1)
        def _():
            out_ref[...] = acc_ref[...]

    return kernel


def mape_loss(output: jax.Array, target: jax.Array) -> jax.Array:
    assert output.shape == target.shape, "output/target must have the same shape"
    n_elements = output.size
    if n_elements == 0:
        return jnp.float32(jnp.nan)

    o_flat = output.reshape(-1)
    t_flat = target.reshape(-1)

    # Only pad when the element count is not a multiple of 128 (rare for ML
    # tensors).  Zero-padding BOTH operands contributes |0-0|/eps = 0 to the
    # sum, so no extra masking is needed for the padded elements.
    pad = (-n_elements) % LANES
    if pad:
        o_flat = jnp.pad(o_flat, (0, pad))
        t_flat = jnp.pad(t_flat, (0, pad))

    rows = o_flat.size // LANES
    o2 = o_flat.reshape(rows, LANES)
    t2 = t_flat.reshape(rows, LANES)

    splits, use_approx = _chip_profile()

    # Tile sizing: biggest block up to MAX_TILE_ROWS; if the whole slab is
    # smaller, the block equals the full array (always a legal block shape).
    tile_rows = min(MAX_TILE_ROWS, rows)
    num_tiles = pl.cdiv(rows, tile_rows)
    if num_tiles < splits:
        splits = 1                     # nothing to split -> avoid duplicate work
    inner_steps = pl.cdiv(num_tiles, splits)
    total_logical_tiles = splits * inner_steps
    # First logical tile that needs masking: the last real tile if it is
    # ragged, else only the clamped out-of-range duplicates (if any).
    mask_from = num_tiles - 1 if (rows % tile_rows) else num_tiles
    # Accumulator height: up to 8 vregs of independent add chains.
    acc_rows = next((d for d in (64, 32, 16, 8) if tile_rows % d == 0), 8)

    kernel = _make_mape_kernel(tile_rows, acc_rows, rows, inner_steps,
                               mask_from, total_logical_tiles, splits,
                               use_approx)

    if splits == 1:
        grid = (inner_steps,)
        in_index = lambda i: (i, 0)
        out_index = lambda i: (0, 0)
        semantics = ("arbitrary",)
    else:
        grid = (splits, inner_steps)
        # Clamp out-of-range logical tiles to the last valid block; their
        # contribution is zeroed by the in-kernel mask.
        in_index = lambda c, i: (jnp.minimum(c * inner_steps + i,
                                             num_tiles - 1), 0)
        out_index = lambda c, i: (c, 0)
        # TODO(synk): if a v7x profile shows one idle TensorCore, switch this
        # axis to pltpu.CORE_PARALLEL.
        semantics = ("parallel", "arbitrary")

    partials = pl.pallas_call(
        kernel,
        out_shape=jax.ShapeDtypeStruct((splits * acc_rows, LANES), jnp.float32),
        grid_spec=pltpu.PrefetchScalarGridSpec(
            num_scalar_prefetch=0,
            grid=grid,
            in_specs=[
                pl.BlockSpec((tile_rows, LANES), in_index),
                pl.BlockSpec((tile_rows, LANES), in_index),
            ],
            out_specs=pl.BlockSpec((acc_rows, LANES), out_index),
            scratch_shapes=[pltpu.VMEM((acc_rows, LANES), jnp.float32)],
        ),
        compiler_params=pltpu.CompilerParams(
            dimension_semantics=semantics,
            vmem_limit_bytes=VMEM_LIMIT_BYTES,
        ),
    )(o2, t2)

    # Final (tiny) reduce of the per-core partial blocks + mean normalization.
    return (jnp.sum(partials) / n_elements).astype(jnp.float32)


if __name__ == "__main__":
    key = jax.random.PRNGKey(0)
    k_out, k_tgt = jax.random.split(key)

    # Small regression-style inputs: batch=2, channels=4, spatial=16x16.
    shape = (2, 4, 16, 16)
    output = jax.random.normal(k_out, shape, dtype=jnp.float32)
    # Keep target away from zero so the reference value is well-conditioned.
    target = jax.random.normal(k_tgt, shape, dtype=jnp.float32) + 3.0

    loss = mape_loss(output, target)
    jax.block_until_ready(loss)

    # Pure-JAX reference check. Tolerance loosened only on chips where the
    # EUP approximate reciprocal path is used.
    ref = jnp.mean(jnp.abs(output - target) / jnp.maximum(jnp.abs(target), EPS))
    _, _used_approx = _chip_profile()
    rtol = 2e-3 if _used_approx else 1e-5
    assert jnp.allclose(loss, ref, rtol=rtol, atol=1e-6), (loss, ref)

    print("KERNEL_OK")
</pallas_src>

<mosaic_0001>
module attributes {stable_mosaic.version = 11 : i64} {
  func.func @kernel(%arg0: i32, %arg1: memref<16x128xf32, #tpu.memory_space<vmem>>, %arg2: memref<16x128xf32, #tpu.memory_space<vmem>>, %arg3: memref<16x128xf32, #tpu.memory_space<vmem>>, %arg4: memref<16x128xf32, #tpu.memory_space<vmem>>) attributes {dimension_semantics = [#tpu.dimension_semantics<arbitrary>], iteration_bounds = array<i64: 1>, scalar_prefetch = 0 : i64, scratch_operands = 1 : i64, tpu.core_type = #tpu.core_type<tc>, window_params = [{transform_indices = @transform_0, window_bounds = array<i64: 16, 128>}, {transform_indices = @transform_1, window_bounds = array<i64: 16, 128>}, {pipeline_mode = #tpu.pipeline_mode<synchronous>, transform_indices = @transform_2, window_bounds = array<i64: 16, 128>}]} {
    %c0_i32 = arith.constant 0 : i32
    %0 = arith.cmpi eq, %arg0, %c0_i32 : i32
    %1 = arith.extui %0 : i1 to i32
    %c0_i32_0 = arith.constant 0 : i32
    %2 = arith.cmpi ne, %1, %c0_i32_0 : i32
    scf.if %2 {
      %cst_11 = arith.constant 0.000000e+00 : f32
      %19 = vector.broadcast %cst_11 : f32 to vector<16x128xf32>
      %c0_12 = arith.constant 0 : index
      %c0_13 = arith.constant 0 : index
      %20 = vector.load %arg4[%c0_12, %c0_13] : memref<16x128xf32, #tpu.memory_space<vmem>>, vector<16x128xf32>
      tpu.vector_store %arg4[%c0_12, %c0_13], %19 {strides = array<i32>} : memref<16x128xf32, #tpu.memory_space<vmem>>, vector<16x128xf32>,
    } else {
    }
    %c0 = arith.constant 0 : index
    %c0_1 = arith.constant 0 : index
    %3 = vector.load %arg1[%c0, %c0_1] : memref<16x128xf32, #tpu.memory_space<vmem>>, vector<16x128xf32>
    %c0_2 = arith.constant 0 : index
    %c0_3 = arith.constant 0 : index
    %4 = vector.load %arg2[%c0_2, %c0_3] : memref<16x128xf32, #tpu.memory_space<vmem>>, vector<16x128xf32>
    %5 = math.absf %4 : vector<16x128xf32>
    %cst = arith.constant 1.170000e-06 : f32
    %6 = vector.broadcast %cst : f32 to vector<16x128xf32>
    %7 = arith.maximumf %5, %6 : vector<16x128xf32>
    %8 = arith.subf %3, %4 : vector<16x128xf32>
    %9 = math.absf %8 : vector<16x128xf32>
    %10 = arith.divf %9, %7 : vector<16x128xf32>
    %c0_4 = arith.constant 0 : index
    %c0_5 = arith.constant 0 : index
    %11 = vector.load %arg4[%c0_4, %c0_5] : memref<16x128xf32, #tpu.memory_space<vmem>>, vector<16x128xf32>
    %12 = vector.shape_cast %10 : vector<16x128xf32> to vector<1x16x128xf32>
    %cst_6 = arith.constant dense<0.000000e+00> : vector<16x128xf32>
    %13 = vector.multi_reduction <add>, %12, %cst_6 [0] : vector<1x16x128xf32> to vector<16x128xf32>
    %14 = arith.addf %11, %13 : vector<16x128xf32>
    %c0_7 = arith.constant 0 : index
    %c0_8 = arith.constant 0 : index
    %15 = vector.load %arg4[%c0_7, %c0_8] : memref<16x128xf32, #tpu.memory_space<vmem>>, vector<16x128xf32>
    tpu.vector_store %arg4[%c0_7, %c0_8], %14 {strides = array<i32>} : memref<16x128xf32, #tpu.memory_space<vmem>>, vector<16x128xf32>,
    %c0_i32_9 = arith.constant 0 : i32
    %16 = arith.cmpi eq, %arg0, %c0_i32_9 : i32
    %17 = arith.extui %16 : i1 to i32
    %c0_i32_10 = arith.constant 0 : i32
    %18 = arith.cmpi ne, %17, %c0_i32_10 : i32
    scf.if %18 {
      %c0_11 = arith.constant 0 : index
      %c0_12 = arith.constant 0 : index
      %19 = vector.load %arg4[%c0_11, %c0_12] : memref<16x128xf32, #tpu.memory_space<vmem>>, vector<16x128xf32>
      %c0_13 = arith.constant 0 : index
      %c0_14 = arith.constant 0 : index
      %20 = vector.load %arg3[%c0_13, %c0_14] : memref<16x128xf32, #tpu.memory_space<vmem>>, vector<16x128xf32>
      tpu.vector_store %arg3[%c0_13, %c0_14], %19 {strides = array<i32>} : memref<16x128xf32, #tpu.memory_space<vmem>>, vector<16x128xf32>,
    } else {
    }
    return
  }
  func.func @transform_0(%arg0: i32) -> (i32, i32) {
    %c0_i32 = arith.constant 0 : i32
    %c0_i32_0 = arith.constant 0 : i32
    return %arg0, %c0_i32 : i32, i32
  }
  func.func @transform_1(%arg0: i32) -> (i32, i32) {
    %c0_i32 = arith.constant 0 : i32
    %c0_i32_0 = arith.constant 0 : i32
    return %arg0, %c0_i32 : i32, i32
  }
  func.func @transform_2(%arg0: i32) -> (i32, i32) {
    %c0_i32 = arith.constant 0 : i32
    %c0_i32_0 = arith.constant 0 : i32
    %c0_i32_1 = arith.constant 0 : i32
    return %c0_i32, %c0_i32_0 : i32, i32
  }
}

</mosaic_0001>

<bundles_post_ra>
// kernel: tpu_custom_call.1
= control target key start
LH: loop header
LB: loop body
LE: loop exit
PB: predicated region body
PF: predicated region fallthrough
CT: control target
= control target key end

     0   :  { %7 = vsyncpa [#allocation4], 0  ;;  %s241_s0 = inlined_call_operand.hbm [shape: f32[16,128], index: 0, kind: input, shape index: {}]   ;;  %s242_s1 = inlined_call_operand.hbm [shape: f32[16,128], index: 1, kind: input, shape index: {}]   ;;  %s243_s2 = inlined_call_operand.hbm [shape: f32[16,128], index: 2, kind: output, shape index: {}]  }
   0x1   :  { %8 = vsyncpa [#allocation7], 0 }
   0x2   :  { %9 = vsyncpa [#allocation5], 0  ;;  %s176_s9 = smov [#allocation3]   ;;  %s104_s13 = scalar_lea.hbm %s241_s0, 256 }
   0x3   :  { %s15_s10 = sshll.u32 %s176_s9, 4  ;;  %p105_p0 = scmp.ne.s32.totalorder %s241_s0, %s104_s13  ;;  %s16_s10 = int_to_ptr.vmem [resolvable:$true] %s15_s10 }
   0x4   :  { %p108_p1 = scmp.lt.u32.totalorder %s104_s13, %s241_s0 }
   0x6   :  { %p110_p2 = pnand %p108_p1, %p105_p0 }
   0x8   :  { %113 = shalt.err (!%p110_p2)
}
   0x9   :  { %s114_s18 = scalar_lea.vmem %s16_s10, 256  ;;  %p119_p4 = scmp.lt.s32.totalorder %s16_s10, %s16_s10 }
   0xa   :  { %p115_p3 = scmp.ne.s32.totalorder %s16_s10, %s114_s18  ;;  %p120_p5 = scmp.lt.s32.totalorder %s114_s18, %s114_s18 }
   0xc   :  { %p121_p6 = por %p120_p5, %p119_p4 }
   0xe   :  { %p122_p7 = pnand %p121_p6, %p115_p3 }
  0x10   :  { %125 = shalt.err (!%p122_p7)
}
  0x11   :  { %s177_s19 = smov 128   ;;  %s178_s20 = smov 8  }
  0x12   :  { %21 = dma.hbm_to_vmem [thread:$0]  %s241_s0, 256, %s16_s10, [#allocation4], %s177_s19, %s177_s19, %s178_s20  }
  0x13   :  { %s179_s23 = smov [#allocation6]   ;;  %s126_s27 = scalar_lea.hbm %s242_s1, 256 }
  0x14   :  { %s27_s24 = sshll.u32 %s179_s23, 4  ;;  %p127_p8 = scmp.ne.s32.totalorder %s242_s1, %s126_s27  ;;  %s28_s24 = int_to_ptr.vmem [resolvable:$true] %s27_s24 }
  0x15   :  { %p130_p9 = scmp.lt.u32.totalorder %s126_s27, %s242_s1 }
  0x17   :  { %p132_p10 = pnand %p130_p9, %p127_p8 }
  0x19   :  { %135 = shalt.err (!%p132_p10)
}
  0x1a   :  { %s136_s4 = scalar_lea.vmem %s28_s24, 256  ;;  %p141_p12 = scmp.lt.s32.totalorder %s28_s24, %s28_s24 }
  0x1b   :  { %p137_p11 = scmp.ne.s32.totalorder %s28_s24, %s136_s4  ;;  %p142_p13 = scmp.lt.s32.totalorder %s136_s4, %s136_s4 }
  0x1d   :  { %p143_p0 = por %p142_p13, %p141_p12 }
  0x1f   :  { %p144_p1 = pnand %p143_p0, %p137_p11 }
  0x21   :  { %147 = shalt.err (!%p144_p1)
}
  0x22   :  { %33 = dma.hbm_to_vmem [thread:$0]  %s242_s1, 256, %s28_s24, [#allocation7], %s177_s19, %s177_s19, %s178_s20  }
  0x23   :  { %170 = dma.done.wait [#allocation4], 256  }
  0x24   :  { %171 = vsyncadd [#allocation4], 4294967040 }
  0x25   :  { %172 = dma.done.wait [#allocation7], 256  }
  0x26   :  { %173 = vsyncadd [#allocation7], 4294967040  ;;  %v48_v0 = vld [vmem:[#allocation6] sm:$0xff]  ;;  %v49_v2 = vld [vmem:[#allocation6 + $0x8] sm:$0xff]  ;;  %s180_s6 = smov [#allocation8]  }
  0x27   :  { %v50_v1 = vand.u32 2147483647, %v48_v0  ;;  %v51_v3 = vand.u32 2147483647, %v49_v2  ;;  %v46_v6 = vld [vmem:[#allocation3] sm:$0xff]  ;;  %v47_v7 = vld [vmem:[#allocation3 + $0x8] sm:$0xff] }
  0x28   :  { %v54_v8 = vsub.f32 %v46_v6, %v48_v0  ;;  %v55_v9 = vsub.f32 %v47_v7, %v49_v2  ;;  %s82_s1 = sshll.u32 %s180_s6, 4  ;;  %s83_s1 = int_to_ptr.vmem [resolvable:$true] %s82_s1 }
  0x29   :  { %v52_v4 = vmax.f32 %v50_v1, 1.17e-06  ;;  %v53_v5 = vmax.f32 %v51_v3, 1.17e-06  ;;  %s148_s7 = scalar_lea.vmem %s83_s1, 256  ;;  %p153_p3 = scmp.lt.s32.totalorder %s83_s1, %s83_s1 }
  0x2a   :  { %v56_v10 = vand.u32 2147483647, %v54_v8  ;;  %v57_v11 = vand.u32 2147483647, %v55_v9  ;;  %p149_p2 = scmp.ne.s32.totalorder %s83_s1, %s148_s7  ;;  %p154_p4 = scmp.lt.s32.totalorder %s148_s7, %s148_s7 }
  0x2b   :  { %100 = vrcp.f32 %v52_v4 }
  0x2c   :  { %102 = vrcp.f32 %v53_v5  ;;  %p155_p5 = por %p154_p4, %p153_p3 }
  0x2e   :  { %p156_p6 = pnand %p155_p5, %p149_p2 }
  0x35   :  { %v101_v12 = vpop.eup %100 }
  0x36   :  { %v103_v13 = vpop.eup %102  ;;  %v59_v14 = vmul.f32 %v101_v12, %v56_v10 }
  0x37   :  { %v61_v15 = vmul.f32 %v103_v13, %v57_v11 }
  0x38   :  { %75 = vst [vmem:[#allocation8] sm:$0xff] %v59_v14 }
  0x39   :  { %76 = vst [vmem:[#allocation8 + $0x8] sm:$0xff] %v61_v15 }
  0x3a   :  { %159 = shalt.err (!%p156_p6)
}
  0x3b   :  { %s160_s10 = scalar_lea.hbm %s243_s2, 256 }
  0x3c   :  { %p161_p7 = scmp.ne.s32.totalorder %s243_s2, %s160_s10  ;;  %p164_p8 = scmp.lt.u32.totalorder %s160_s10, %s243_s2 }
  0x3e   :  { %p166_p9 = pnand %p164_p8, %p161_p7 }
  0x40   :  { %169 = shalt.err (!%p166_p9)
}
  0x41   :  { %88 = dma.vmem_to_hbm [thread:$0]  %s83_s1, 256, %s243_s2, [#allocation5], %s177_s19, %s177_s19, %s178_s20  }
  0x42   :  { %174 = dma.done.wait [#allocation5], 256  }
  0x43   :  { %175 = vsyncadd [#allocation5], 4294967040 }
  0x44   :  { %92 = vsyncpa [#allocation4], 1 }
  0x45   :  { %93 = vsyncpa [#allocation7], 1 }
  0x46   :  { %94 = vsyncpa [#allocation5], 1 }

</bundles_post_ra>
